<compile_context>
chip_gen: v5e
topology: v5e:2x2
jax: 0.10.0
libtpu: 0.0.40
codegen_flags: <defaults>
</compile_context>

<pallas_src>
import jax
import jax.numpy as jnp
from jax import lax
from jax.experimental import pallas as pl
from jax.experimental.pallas import tpu as pltpu

HIDDEN = 1024       # fixed by the module: nn.Linear(1024, 1024)
NUM_CLASSES = 2     # fixed by the module: nn.Linear(1024, 2)
LANE = 128
SUBLANE = 8


def _head_kernel(feat_ref, cnt_ref, w_ref, b_ref, out_ref, acc_ref):
    """One (batch-tile, seq-tile) grid step.

    feat_ref : (tb, ts, H) native-dtype feature tile (pipelined over seq axis)
    cnt_ref  : (tb, 1, 1)  int32 non-padding token counts
    w_ref    : (H, Cp)     f32 fused head weight (resident across the grid)
    b_ref    : (1, Cp)     f32 fused head bias   (resident across the grid)
    out_ref  : (tb, 1, Cp) f32 logits (lane-dense padded class dim)
    acc_ref  : (tb, H)     f32 VMEM accumulator for the masked sequence sum
    """
    s = pl.program_id(1)
    num_s = pl.num_programs(1)

    @pl.when(s == 0)
    def _():
        acc_ref[...] = jnp.zeros_like(acc_ref)

    # DMA'd in native dtype (bf16/f32); upcast in VMEM for the VPU accumulate.
    feats = feat_ref[...].astype(jnp.float32)                  # (tb, ts, H)
    tb, ts, _ = feats.shape

    # attentions_mask: global position < count  (int32 compare; select, not
    # multiply, so unspecified edge-block data can never poison the sum).
    pos = lax.broadcasted_iota(jnp.int32, (tb, ts, 1), 1) + s * ts
    valid = pos < cnt_ref[...]                                 # (tb, ts, 1)
    masked = jnp.where(valid, feats, 0.0)                      # (tb, ts, H)

    acc_ref[...] += jnp.sum(masked, axis=1)                    # (tb, H)

    @pl.when(s == num_s - 1)
    def _():
        # mean pooling: divide once per batch tile, off the hot loop.
        cnt_f = cnt_ref[...].astype(jnp.float32)               # (tb, 1, 1)
        inv = pl.reciprocal(cnt_f)[:, 0, :]                    # (tb, 1)
        pooled = acc_ref[...] * inv                            # (tb, H)
        # dropout -> identity (inference); fused dense + out_proj on the MXU.
        logits = (jnp.dot(pooled, w_ref[...],
                          preferred_element_type=jnp.float32)
                  + b_ref[...])                                # (tb, Cp)
        out_ref[...] = logits[:, None, :].astype(out_ref.dtype)


def make_fused_head_params(w_dense, b_dense, w_out, b_out):
    """Fold dense + out_proj once (valid: no activation between them, dropout
    is identity at inference).  Call this OUTSIDE the per-forward path."""
    f32 = jnp.float32
    C = w_out.shape[1]
    w_fused = jnp.dot(w_dense.astype(f32), w_out.astype(f32),
                      preferred_element_type=f32)                  # (H, C)
    b_fused = (jnp.dot(b_dense.astype(f32), w_out.astype(f32),
                       preferred_element_type=f32)
               + b_out.astype(f32))                                # (C,)
    c_pad = pl.cdiv(C, LANE) * LANE                                # >= 128
    w_fused = jnp.pad(w_fused, ((0, 0), (0, c_pad - C)))
    b_fused = jnp.pad(b_fused, (0, c_pad - C)).reshape(1, c_pad)
    return w_fused, b_fused


def roberta_mean_pooling_head(features, non_padding_token_count,
                              w_fused, b_fused, *,
                              seq_tile=256, batch_tile=8,
                              num_classes=NUM_CLASSES):
    """Forward of RobertaMeanPoolingClassificationHead (eval mode).

    features                : (B, S, H) float (f32 or bf16 — DMA'd as-is)
    non_padding_token_count : (B,) int
    w_fused, b_fused        : outputs of make_fused_head_params (precomputed)
    """
    B, S, H = features.shape
    c_pad = w_fused.shape[1]

    # ---- sequence tiling: multiple of 8 (or the full dim for tiny S); the
    # in-kernel mask handles a partial last block, no feature padding needed.
    if S % SUBLANE == 0:
        ts = min(seq_tile, S)
    elif S < SUBLANE:
        ts = S
    else:
        ts = min(seq_tile, (S // SUBLANE) * SUBLANE)
    grid_s = pl.cdiv(S, ts)

    # ---- batch tiling: guarantee >= 2 batch tiles when B >= 2 so the
    # "parallel" axis actually shards across v7x's two TensorCores.
    tb = min(batch_tile, B)
    if B >= 2 and pl.cdiv(B, tb) < 2:
        tb = pl.cdiv(B, 2)
    grid_b = pl.cdiv(B, tb)
    b_padded = grid_b * tb

    # counts are tiny -> pad/reshape them (never the feature tensor).
    cnt = non_padding_token_count.astype(jnp.int32)
    if b_padded != B:
        cnt = jnp.pad(cnt, (0, b_padded - B), constant_values=1)
    cnt = cnt.reshape(b_padded, 1, 1)

    out = pl.pallas_call(
        _head_kernel,
        out_shape=jax.ShapeDtypeStruct((b_padded, 1, c_pad), jnp.float32),
        grid=(grid_b, grid_s),
        in_specs=[
            # features: pipelined (tb, ts, H) tiles, double-buffered by Pallas
            pl.BlockSpec((tb, ts, H), lambda b, s: (b, s, 0)),
            # counts: one small block per batch tile (last two dims full-size)
            pl.BlockSpec((tb, 1, 1), lambda b, s: (b, 0, 0)),
            # fused weight + bias: resident (same block every grid step)
            pl.BlockSpec((H, c_pad), lambda b, s: (0, 0)),
            pl.BlockSpec((1, c_pad), lambda b, s: (0, 0)),
        ],
        out_specs=pl.BlockSpec((tb, 1, c_pad), lambda b, s: (b, 0, 0)),
        scratch_shapes=[pltpu.VMEM((tb, H), jnp.float32)],
        compiler_params=pltpu.CompilerParams(
            dimension_semantics=("parallel", "arbitrary"),
            vmem_limit_bytes=48 * 1024 * 1024,
        ),
    )(features, cnt, w_fused, b_fused)

    return out[:B, 0, :num_classes]


def _reference(features, counts, w_dense, b_dense, w_out, b_out):
    """Pure-JAX reference matching the PyTorch forward (eval mode), unfused."""
    S = features.shape[1]
    mask = (jnp.arange(S)[None, :] < counts[:, None]).astype(jnp.float32)
    summed = jnp.sum(features.astype(jnp.float32) * mask[:, :, None], axis=1)
    mean = summed / counts[:, None].astype(jnp.float32)
    x = mean @ w_dense + b_dense          # dropout = identity (eval)
    x = x @ w_out + b_out
    return x


if __name__ == "__main__":
    key = jax.random.PRNGKey(0)
    kf, kw1, kb1, kw2, kb2 = jax.random.split(key, 5)

    B, S, H, C = 2, 8, HIDDEN, NUM_CLASSES

    features = jax.random.normal(kf, (B, S, H), dtype=jnp.float32)
    non_padding_token_count = jnp.array([5, 8], dtype=jnp.int32)

    # Deterministic synthetic parameters (PyTorch-Linear-like uniform init).
    lim = 1.0 / (H ** 0.5)
    w_dense = jax.random.uniform(kw1, (H, H), jnp.float32, -lim, lim)  # [in, out]
    b_dense = jax.random.uniform(kb1, (H,), jnp.float32, -lim, lim)
    w_out = jax.random.uniform(kw2, (H, C), jnp.float32, -lim, lim)    # [in, out]
    b_out = jax.random.uniform(kb2, (C,), jnp.float32, -lim, lim)

    # Fused head params computed once, outside the per-call path.
    w_fused, b_fused = make_fused_head_params(w_dense, b_dense, w_out, b_out)
    w_fused, b_fused = jax.block_until_ready((w_fused, b_fused))

    out = roberta_mean_pooling_head(
        features, non_padding_token_count, w_fused, b_fused)
    out = jax.block_until_ready(out)

    ref = _reference(features, non_padding_token_count,
                     w_dense, b_dense, w_out, b_out)
    assert out.shape == (B, C), out.shape
    assert jnp.allclose(out, ref, atol=1e-3, rtol=1e-3), (out, ref)

    print("KERNEL_OK")
</pallas_src>

<mosaic_0001>
module attributes {stable_mosaic.version = 11 : i64} {
  func.func @_head_kernel(%arg0: i32, %arg1: i32, %arg2: memref<1x8x1024xf32, #tpu.memory_space<vmem>>, %arg3: memref<1x1x1xi32, #tpu.memory_space<vmem>>, %arg4: memref<1024x128xf32, #tpu.memory_space<vmem>>, %arg5: memref<1x128xf32, #tpu.memory_space<vmem>>, %arg6: memref<1x1x128xf32, #tpu.memory_space<vmem>>, %arg7: memref<1x1024xf32, #tpu.memory_space<vmem>>) attributes {dimension_semantics = [#tpu.dimension_semantics<parallel>, #tpu.dimension_semantics<arbitrary>], iteration_bounds = array<i64: 2, 1>, scalar_prefetch = 0 : i64, scratch_operands = 1 : i64, tpu.core_type = #tpu.core_type<tc>, window_params = [{transform_indices = @transform_0, window_bounds = array<i64: 1, 8, 1024>}, {transform_indices = @transform_1, window_bounds = array<i64: 1, 1, 1>}, {pipeline_mode = #tpu.pipeline_mode<synchronous>, transform_indices = @transform_2, window_bounds = array<i64: 1024, 128>}, {pipeline_mode = #tpu.pipeline_mode<synchronous>, transform_indices = @transform_3, window_bounds = array<i64: 1, 128>}, {transform_indices = @transform_4, window_bounds = array<i64: 1, 1, 128>}]} {
    %c0_i32 = arith.constant 0 : i32
    %0 = arith.cmpi eq, %arg1, %c0_i32 : i32
    %1 = arith.extui %0 : i1 to i32
    %c0_i32_0 = arith.constant 0 : i32
    %2 = arith.cmpi ne, %1, %c0_i32_0 : i32
    scf.if %2 {
      %cst_13 = arith.constant 0.000000e+00 : f32
      %22 = vector.broadcast %cst_13 : f32 to vector<1x1024xf32>
      %c0_14 = arith.constant 0 : index
      %c0_15 = arith.constant 0 : index
      %23 = vector.load %arg7[%c0_14, %c0_15] : memref<1x1024xf32, #tpu.memory_space<vmem>>, vector<1x1024xf32>
      tpu.vector_store %arg7[%c0_14, %c0_15], %22 {strides = array<i32>} : memref<1x1024xf32, #tpu.memory_space<vmem>>, vector<1x1024xf32>,
    } else {
    }
    %c0 = arith.constant 0 : index
    %c0_1 = arith.constant 0 : index
    %c0_2 = arith.constant 0 : index
    %3 = vector.load %arg2[%c0, %c0_1, %c0_2] : memref<1x8x1024xf32, #tpu.memory_space<vmem>>, vector<1x8x1024xf32>
    %4 = tpu.iota {dimensions = array<i32: 1>} : vector<1x8x1xi32>
    %c8_i32 = arith.constant 8 : i32
    %5 = arith.muli %arg1, %c8_i32 : i32
    %6 = vector.broadcast %5 : i32 to vector<1x8x1xi32>
    %7 = arith.addi %4, %6 : vector<1x8x1xi32>
    %c0_3 = arith.constant 0 : index
    %c0_4 = arith.constant 0 : index
    %c0_5 = arith.constant 0 : index
    %8 = vector.load %arg3[%c0_3, %c0_4, %c0_5] : memref<1x1x1xi32, #tpu.memory_space<vmem>>, vector<1x1x1xi32>
    %9 = vector.broadcast %8 : vector<1x1x1xi32> to vector<1x8x1xi32>
    %10 = arith.cmpi slt, %7, %9 : vector<1x8x1xi32>
    %cst = arith.constant 0.000000e+00 : f32
    %11 = vector.shape_cast %10 : vector<1x8x1xi1> to vector<1x8x1xi1>
    %12 = vector.broadcast %11 : vector<1x8x1xi1> to vector<1x8x1024xi1>
    %13 = vector.broadcast %cst : f32 to vector<1x8x1024xf32>
    %14 = arith.select %12, %3, %13 : vector<1x8x1024xi1>, vector<1x8x1024xf32>
    %c0_6 = arith.constant 0 : index
    %c0_7 = arith.constant 0 : index
    %15 = vector.load %arg7[%c0_6, %c0_7] : memref<1x1024xf32, #tpu.memory_space<vmem>>, vector<1x1024xf32>
    %cst_8 = arith.constant dense<0.000000e+00> : vector<1x1024xf32>
    %16 = vector.multi_reduction <add>, %14, %cst_8 [1] : vector<1x8x1024xf32> to vector<1x1024xf32>
    %17 = arith.addf %15, %16 : vector<1x1024xf32>
    %c0_9 = arith.constant 0 : index
    %c0_10 = arith.constant 0 : index
    %18 = vector.load %arg7[%c0_9, %c0_10] : memref<1x1024xf32, #tpu.memory_space<vmem>>, vector<1x1024xf32>
    tpu.vector_store %arg7[%c0_9, %c0_10], %17 {strides = array<i32>} : memref<1x1024xf32, #tpu.memory_space<vmem>>, vector<1x1024xf32>,
    %c0_i32_11 = arith.constant 0 : i32
    %19 = arith.cmpi eq, %arg1, %c0_i32_11 : i32
    %20 = arith.extui %19 : i1 to i32
    %c0_i32_12 = arith.constant 0 : i32
    %21 = arith.cmpi ne, %20, %c0_i32_12 : i32
    scf.if %21 {
      %c0_13 = arith.constant 0 : index
      %c0_14 = arith.constant 0 : index
      %c0_15 = arith.constant 0 : index
      %22 = vector.load %arg3[%c0_13, %c0_14, %c0_15] : memref<1x1x1xi32, #tpu.memory_space<vmem>>, vector<1x1x1xi32>
      %23 = arith.sitofp %22 : vector<1x1x1xi32> to vector<1x1x1xf32>
      %24 = tpu.reciprocal %23 : vector<1x1x1xf32> -> vector<1x1x1xf32>
      %25 = vector.shape_cast %24 : vector<1x1x1xf32> to vector<1x1xf32>
      %c0_16 = arith.constant 0 : index
      %c0_17 = arith.constant 0 : index
      %26 = vector.load %arg7[%c0_16, %c0_17] : memref<1x1024xf32, #tpu.memory_space<vmem>>, vector<1x1024xf32>
      %27 = vector.broadcast %25 : vector<1x1xf32> to vector<1x1024xf32>
      %28 = arith.mulf %26, %27 : vector<1x1024xf32>
      %c0_18 = arith.constant 0 : index
      %c0_19 = arith.constant 0 : index
      %29 = vector.load %arg4[%c0_18, %c0_19] : memref<1024x128xf32, #tpu.memory_space<vmem>>, vector<1024x128xf32>
      %cst_20 = arith.constant dense<0.000000e+00> : vector<1x128xf32>
      %30 = tpu.matmul %28, %29, %cst_20 {dimension_numbers = #tpu.dot_dimension_numbers<[1], [0], [0], [1], [0, 0, 1, 1], [], []>} : vector<1x1024xf32>, vector<1024x128xf32>, vector<1x128xf32> -> vector<1x128xf32>
      %c0_21 = arith.constant 0 : index
      %c0_22 = arith.constant 0 : index
      %31 = vector.load %arg5[%c0_21, %c0_22] : memref<1x128xf32, #tpu.memory_space<vmem>>, vector<1x128xf32>
      %32 = arith.addf %30, %31 : vector<1x128xf32>
      %33 = vector.shape_cast %32 : vector<1x128xf32> to vector<1x1x128xf32>
      %c0_23 = arith.constant 0 : index
      %c0_24 = arith.constant 0 : index
      %c0_25 = arith.constant 0 : index
      %34 = vector.load %arg6[%c0_23, %c0_24, %c0_25] : memref<1x1x128xf32, #tpu.memory_space<vmem>>, vector<1x1x128xf32>
      tpu.vector_store %arg6[%c0_23, %c0_24, %c0_25], %33 {strides = array<i32>} : memref<1x1x128xf32, #tpu.memory_space<vmem>>, vector<1x1x128xf32>,
    } else {
    }
    return
  }
  func.func @transform_0(%arg0: i32, %arg1: i32) -> (i32, i32, i32) {
    %c0_i32 = arith.constant 0 : i32
    %c0_i32_0 = arith.constant 0 : i32
    return %arg0, %arg1, %c0_i32 : i32, i32, i32
  }
  func.func @transform_1(%arg0: i32, %arg1: i32) -> (i32, i32, i32) {
    %c0_i32 = arith.constant 0 : i32
    %c0_i32_0 = arith.constant 0 : i32
    %c0_i32_1 = arith.constant 0 : i32
    return %arg0, %c0_i32, %c0_i32_0 : i32, i32, i32
  }
  func.func @transform_2(%arg0: i32, %arg1: i32) -> (i32, i32) {
    %c0_i32 = arith.constant 0 : i32
    %c0_i32_0 = arith.constant 0 : i32
    %c0_i32_1 = arith.constant 0 : i32
    return %c0_i32, %c0_i32_0 : i32, i32
  }
  func.func @transform_3(%arg0: i32, %arg1: i32) -> (i32, i32) {
    %c0_i32 = arith.constant 0 : i32
    %c0_i32_0 = arith.constant 0 : i32
    %c0_i32_1 = arith.constant 0 : i32
    return %c0_i32, %c0_i32_0 : i32, i32
  }
  func.func @transform_4(%arg0: i32, %arg1: i32) -> (i32, i32, i32) {
    %c0_i32 = arith.constant 0 : i32
    %c0_i32_0 = arith.constant 0 : i32
    %c0_i32_1 = arith.constant 0 : i32
    return %arg0, %c0_i32, %c0_i32_0 : i32, i32, i32
  }
}

</mosaic_0001>

<bundles_post_ra>
// kernel: tpu_custom_call.1
= control target key start
LH: loop header
LB: loop body
LE: loop exit
PB: predicated region body
PF: predicated region fallthrough
CT: control target
= control target key end

     0   :  { %9 = vsyncpa [#allocation4], 0  ;;  %s1275_s0 = inlined_call_operand.hbm [shape: f32[2,8,1024], index: 0, kind: input, shape index: {}]   ;;  %s1276_s1 = inlined_call_operand.vmem [shape: s32[2,1,1], index: 1, kind: input, shape index: {}]   ;;  %s1277_s2 = inlined_call_operand.hbm [shape: f32[1024,128], index: 2, kind: input, shape index: {}]   ;;  %s1278_s3 = inlined_call_operand.vmem [shape: f32[1,128], index: 3, kind: input, shape index: {}]   ;;  %s1279_s4 = inlined_call_operand.hbm [shape: f32[2,1,128], index: 4, kind: output, shape index: {}]  }
   0x1   :  { %11 = vsyncpa [#allocation4 + $0x1], 0 }
   0x2   :  { %12 = vsyncpa [#allocation7], 0 }
   0x3   :  { %13 = vsyncpa [#allocation5], 0 }
   0x4   :  { %15 = vsyncpa [#allocation5 + $0x1], 0  ;;  %s1091_s15 = smov 0   ;;  %s1093_s16 = smov 0  }
   0x5   :  { %s1095_s17 = smov 0   ;;  %s1097_s18 = smov 0  }
   0x6   :  { %s1099_s19 = smov 0   ;;  %s1101_s20 = smov 0  }
   0x7 LB: > { %s820_s21 = sadd.s32 4294967295, %s1060_s20   ;;  %p822_p0 = scmp.ge.s32.totalorder %s1060_s20, 1  ;;  %s1060_s20 = sphi %s1101_s20, %s21_s20   ;;  %s1056_s19 = sphi %s1099_s19, %s1292_s19   ;;  %s1052_s18 = sphi %s1097_s18, %s1291_s18   ;;  %s1048_s17 = sphi %s1095_s17, %s1290_s17   ;;  %s1044_s16 = sphi %s1093_s16, %s1289_s16   ;;  %s1040_s15 = sphi %s1091_s15, %s1288_s15  }
   0x8   : > { %p1123_p1 = scmp.eq.s32.totalorder %s820_s21, 0  ;;  %p160_p2 = scmp.lt.s32.totalorder %s1060_s20, 3 }
   0x9   : > { %s171_s25 = sshll.u32 %s1277_s2, 4  ;;  %s1062_s27 = smov [#allocation6]   ;;  %s172_s25 = int_to_ptr.hbm [resolvable:$true] %s171_s25 }
   0xa   : > { %p1131_p3 = pnand %p822_p0, %p160_p2  ;;  %s173_s28 = sshll.u32 %s1062_s27, 4  ;;  %s174_s28 = int_to_ptr.vmem [resolvable:$true] %s173_s28 }
   0xb   : > { %p824_p6 = scmp.ge.s32.totalorder %s1060_s20, 2  ;;  %s1063_s29 = smov 128  }
   0xc   : > { %p842_p4 = pneg %p1131_p3  ;;  %s1064_s30 = smov 8  }
   0xd   : > { %s821_s5 = sadd.s32 4294967294, %s1060_s20   ;;  %s33_s6 = sadd.s32 1, %s1056_s19 }
   0xe   : > { %p843_p5 = pnand %p842_p4, %p1123_p1  ;;  %s42_s7 = sadd.s32 1, %s1048_s17 }
   0xf   : > { %p35_p7 = scmp.ge.s32.totalorder %s33_s6, 2  ;;  %p49_p8 = scmp.ne.s32.totalorder %s1048_s17, %s1044_s16 }
  0x10   : > { %845 = dma.hbm_to_vmem [thread:$0]  (!%p843_p5), %s172_s25, 16384, %s174_s28, [#allocation7], %s1063_s29, %s1063_s29, %s1064_s30  }
  0x11   : > { %p50_p9 = scmp.eq.s32.totalorder %s1060_s20, 0  ;;  %p55_p10 = scmp.ne.s32.totalorder %s1044_s16, %s1040_s15 }
  0x12   : > { %s1294_s6 = smov (%p35_p7, %s33_s6), 0  ;;  %p147_p13 = scmp.eq.s32.totalorder %s820_s21, 1 }
  0x13   : > { %p1150_p11 = por %p50_p9, %p49_p8  ;;  %p1156_p12 = por %p1123_p1, %p55_p10 }
  0x14   : > { %s37_s10 = ssub.s32 %s1056_s19, %s1294_s6  ;;  %p153_p2 = scmp.eq.s32.totalorder %s821_s5, 1 }
  0x15   : > { %p40_p0 = scmp.eq.s32.totalorder %s37_s10, 0  ;;  %p1162_p4 = por %p147_p13, %p49_p8 }
  0x16   : > { %p855_p5 = scmp.lt.s32.totalorder %s1060_s20, 2  ;;  %p1170_p7 = por %p153_p2, %p55_p10 }
  0x17   : > { %s1168_s12 = scalar_select %p40_p0, %s1048_s17, %s42_s7  }
  0x18   : > { %s190_s14 = sand.u32 1, %s1048_s17   ;;  %s833_s24 = sshll.u32 %s1056_s19, 6 }
  0x19   : > { %s825_s23 = sshll.u32 %s190_s14, 6  ;;  %s201_s21 = scalar_lea.hbm %s1275_s0, %s833_s24 }
  0x1a   : > { %s194_s28 = scalar_lea.vmem [#allocation3], %s825_s23  ;;  %s203_s30 = sshll.u32 %s201_s21, 4  ;;  %s204_s30 = int_to_ptr.hbm [resolvable:$true] %s203_s30 }
  0x1b   : > { %s205_s29 = sshll.u32 %s194_s28, 4  ;;  %p847_p8 = pnand %p855_p5, %p1150_p11  ;;  %s206_s29 = int_to_ptr.vmem [resolvable:$true] %s205_s29 }
  0x1c   : > { %s191_s5 = scalar_lea.sflag [#allocation4], %s190_s14  ;;  %220 = sbr.rel (%p1131_p3) target bundleno = 332 (0x14c), region = 36 }
  0x1d   : > { %849 = dma.hbm_to_vmem [thread:$0]  (!%p847_p8), %s204_s30, 1024, %s206_s29, %s191_s5  }
  0x1e   : > { %s1184_s7 = sand.u32 (!%p1131_p3), 1, %s1044_s16  }
  0x1f   : > { %s829_s10 = sshll.u32 (!%p1131_p3), %s1184_s7, 6  ;;  %s223_s24 = scalar_lea.sflag (!%p1131_p3), [#allocation4], %s1184_s7 }
  0x20   : > { %s1188_s23 = scalar_lea.vmem (!%p1131_p3), [#allocation3], %s829_s10 }
  0x21   : > { %1027 = dma.done.wait (%p1156_p12), %s223_s24, 1024  }
  0x22   : > { %1029 = vsyncadd (%p1156_p12), %s223_s24, 4294966272 }
  0x23   : > { %1031 = dma.done.wait (%p1123_p1), [#allocation7], 16384  }
  0x24   : > { %1033 = vsyncadd (%p1123_p1), [#allocation7], 4294950912  ;;  %p259_p3 = scmp.lt.s32.totalorder %s1052_s18, 1  ;;  %v1065_v0 = vmov 0   ;;  %v275_v1 = vlaneseq  ;;  %v419_v6 = vld [vmem:[#allocation6 + $0x78] sm:$0xff]  ;;  %v418_v10 = vld [vmem:[#allocation6 + $0x70] sm:$0xff]  ;;  %s720_s28 = scalar_lea.hbm %s1279_s4, %s1052_s18 }
  0x25   : > { %910 = vset.pattern.permute.xlu0 %v1065_v0  ;;  %v435_v7 = vld [vmem:[#allocation6 + $0xf8] sm:$0xff]  ;;  %550 = vmatpush.msra.mxu0 %v419_v6  ;;  %v434_v11 = vld [vmem:[#allocation6 + $0xf0] sm:$0xff]  ;;  %v417_v15 = vld [vmem:[#allocation6 + $0x68] sm:$0xff]  ;;  %vm360_vm6 = vcmask 1040384   ;;  %vm362_vm7 = vcmask 1042434   ;;  %vm364_vm8 = vcmask 1041408  }
  0x26   : > { %s260_s26 = scalar_select %p259_p3, %s1052_s18, 1  ;;  %v276_v2 = vshrl.u32 %v275_v1, 7  ;;  %v451_v8 = vld [vmem:[#allocation6 + $0x178] sm:$0xff]  ;;  %570 = vmatpush.msra.mxu1 %v435_v7  ;;  %v450_v13 = vld [vmem:[#allocation6 + $0x170] sm:$0xff]  ;;  %v433_v16 = vld [vmem:[#allocation6 + $0xe8] sm:$0xff]  ;;  %vm366_vm9 = vcmask 1044484  }
  0x27   : > { %v467_v9 = vld [vmem:[#allocation6 + $0x1f8] sm:$0xff]  ;;  %590 = vmatpush.msra.mxu2 %v451_v8  ;;  %v466_v14 = vld [vmem:[#allocation6 + $0x1f0] sm:$0xff]  ;;  %551 = vmatpush.msra.mxu0 %v418_v10  ;;  %v449_v17 = vld [vmem:[#allocation6 + $0x168] sm:$0xff]  ;;  %vm368_vm10 = vcmask 1046534   ;;  %vm370_vm11 = vcmask 1045508   ;;  %vm372_vm12 = vcmask 1043456  }
  0x28   : > { %s261_s25 = scalar_lea.vmem %s1276_s1, %s260_s26  ;;  %610 = vmatpush.msra.mxu3 %v467_v9  ;;  %571 = vmatpush.msra.mxu1 %v434_v11  ;;  %v465_v18 = vld [vmem:[#allocation6 + $0x1e8] sm:$0xff]  ;;  %v416_v19 = vld [vmem:[#allocation6 + $0x60] sm:$0xff]  ;;  %v415_v23 = vld [vmem:[#allocation6 + $0x58] sm:$0xff]  ;;  %s258_s29 = scalar_lea.vmem [#allocation8], %s1184_s7 }
  0x29   : > { %v911_v3 = vld [vmem:[%s261_s25] ss:$0 sm:$0xff]  ;;  %591 = vmatpush.msra.mxu2 %v450_v13  ;;  %552 = vmatpush.msra.mxu0 %v417_v15  ;;  %v431_v24 = vld [vmem:[#allocation6 + $0xd8] sm:$0xff]  ;;  %v414_v28 = vld [vmem:[#allocation6 + $0x50] sm:$0xff]  ;;  %s722_s30 = sshll.u32 %s258_s29, 4  ;;  %s724_s5 = sshll.u32 %s720_s28, 4  ;;  %s723_s30 = int_to_ptr.vmem [resolvable:$true] %s722_s30  ;;  %s725_s5 = int_to_ptr.hbm [resolvable:$true] %s724_s5 }
  0x2a   : > { %v380_v4 = vld [vmem:[%s261_s25] sm:$0x1]  ;;  %vm282_vm0 = vcmp.lt.s32.totalorder %v276_v2, %v911_v3  ;;  %611 = vmatpush.msra.mxu3 %v466_v14  ;;  %572 = vmatpush.msra.mxu1 %v433_v16  ;;  %v447_v25 = vld [vmem:[#allocation6 + $0x158] sm:$0xff]  ;;  %v430_v30 = vld [vmem:[#allocation6 + $0xd0] sm:$0xff]  ;;  %s712_s10 = scalar_lea.sflag [#allocation5], %s1184_s7  ;;  %s988_s24 = sshra.s32 %s725_s5, 4  ;;  %s989_s24 = int_to_ptr.hbm [resolvable:$true] %s988_s24 }
  0x2b   : > { %v1203_v5 = vcvt.s32.f32 %v380_v4  ;;  %v283_v12 = vsel %vm282_vm0, 1, %v1065_v0  ;;  %v432_v20 = vld [vmem:[#allocation6 + $0xe0] sm:$0xff]  ;;  %592 = vmatpush.msra.mxu2 %v449_v17  ;;  %553 = vmatpush.msra.mxu0 %v416_v19  ;;  %v463_v27 = vld [vmem:[#allocation6 + $0x1d8] sm:$0xff]  ;;  %v446_v31 = vld [vmem:[#allocation6 + $0x150] sm:$0xff]  ;;  %s994_s8 = scalar_lea.hbm %s1279_s4, 2  ;;  %p995_p11 = scmp.lt.s32.totalorder %s989_s24, %s1279_s4 }
  0x2c   : > { %285 = vperm.xlu0 %910, %v283_v12   ;;  %v448_v21 = vld [vmem:[#allocation6 + $0x160] sm:$0xff]  ;;  %612 = vmatpush.msra.mxu3 %v465_v18  ;;  %v462_v33 = vld [vmem:[#allocation6 + $0x1d0] sm:$0xff]  ;;  %v413_v34 = vld [vmem:[#allocation6 + $0x48] sm:$0xff] }
  0x2d   : > { %912 = vrcp.f32 %v1203_v5  ;;  %v464_v22 = vld [vmem:[#allocation6 + $0x1e0] sm:$0xff]  ;;  %573 = vmatpush.msra.mxu1 %v432_v20  ;;  %593 = vmatpush.msra.mxu2 %v448_v21  ;;  %v393_v32 = vand.u32 2147483648, %v1203_v5  ;;  %vm387_vm1 = vweird.f32 %v1203_v5  ;;  %v391_v36 = vand.u32 2147483647, %v1203_v5  ;;  %v429_v37 = vld [vmem:[#allocation6 + $0xc8] sm:$0xff]  ;;  %v411_v47 = vld [vmem:[#allocation6 + $0x38] sm:$0xff] }
  0x2e   : > { %613 = vmatpush.msra.mxu3 %v464_v22  ;;  %554 = vmatpush.msra.mxu0 %v415_v23  ;;  %v445_v38 = vld [vmem:[#allocation6 + $0x148] sm:$0xff]  ;;  %v412_v40 = vld [vmem:[#allocation6 + $0x40] sm:$0xff]  ;;  %v427_v49 = vld [vmem:[#allocation6 + $0xb8] sm:$0xff] }
  0x2f   : > { %574 = vmatpush.msra.mxu1 %v431_v24  ;;  %594 = vmatpush.msra.mxu2 %v447_v25  ;;  %v461_v39 = vld [vmem:[#allocation6 + $0x1c8] sm:$0xff]  ;;  %v428_v42 = vld [vmem:[#allocation6 + $0xc0] sm:$0xff]  ;;  %v394_v45 = vor.u32 1.1754944e-38, %v393_v32  ;;  %vm392_vm4 = vcmp.eq.f32.partialorder %v391_v36, 8.507059e+37  ;;  %v443_v50 = vld [vmem:[#allocation6 + $0x138] sm:$0xff] }
  0x30   : > { %614 = vmatpush.msra.mxu3 %v463_v27  ;;  %555 = vmatpush.msra.mxu0 %v414_v28  ;;  %v444_v43 = vld [vmem:[#allocation6 + $0x140] sm:$0xff]  ;;  %v459_v51 = vld [vmem:[#allocation6 + $0x1b8] sm:$0xff]  ;;  %v410_v53 = vld [vmem:[#allocation6 + $0x30] sm:$0xff] }
  0x31   : > { %575 = vmatpush.msra.mxu1 %v430_v30  ;;  %595 = vmatpush.msra.mxu2 %v446_v31  ;;  %v460_v46 = vld [vmem:[#allocation6 + $0x1c0] sm:$0xff]  ;;  %v426_v54 = vld [vmem:[#allocation6 + $0xb0] sm:$0xff]  ;;  %v409_v58 = vld [vmem:[#allocation6 + $0x28] sm:$0xff] }
  0x32   : > { %615 = vmatpush.msra.mxu3 %v462_v33  ;;  %556 = vmatpush.msra.mxu0 %v413_v34  ;;  %v442_v56 = vld [vmem:[#allocation6 + $0x130] sm:$0xff]  ;;  %v425_v59 = vld [vmem:[#allocation6 + $0xa8] sm:$0xff]  ;;  %v408_v62 = vld [vmem:[#allocation6 + $0x20] sm:$0xff] }
  0x33   : > { %v913_v26 = vpop.eup %912  ;;  %576 = vmatpush.msra.mxu1 %v429_v37  ;;  %596 = vmatpush.msra.mxu2 %v445_v38  ;;  %v458_v57 = vld [vmem:[#allocation6 + $0x1b0] sm:$0xff]  ;;  %v441_v60 = vld [vmem:[#allocation6 + $0x128] sm:$0xff]  ;;  %v424_v63 = vld [vmem:[#allocation6 + $0xa0] sm:$0xff] }
  0x34   : > { %v383_v29 = vmul.f32 %v913_v26, %v1203_v5  ;;  %vm388_vm2 = vweird.f32 %v913_v26  ;;  %616 = vmatpush.msra.mxu3 %v461_v39  ;;  %557 = vmatpush.msra.mxu0 %v412_v40  ;;  %v457_v61 = vld [vmem:[#allocation6 + $0x1a8] sm:$0xff]  ;;  %v440_v0 = vld [vmem:[#allocation6 + $0x120] sm:$0xff]  ;;  %v407_v2 = vld [vmem:[#allocation6 + $0x18] sm:$0xff] }
  0x35   : > { %vm1213_vm3 = vmor %vm387_vm1, %vm388_vm2  ;;  %577 = vmatpush.msra.mxu1 %v428_v42  ;;  %597 = vmatpush.msra.mxu2 %v444_v43  ;;  %v456_v1 = vld [vmem:[#allocation6 + $0x1a0] sm:$0xff]  ;;  %v423_v3 = vld [vmem:[#allocation6 + $0x98] sm:$0xff] }
  0x36   : > { %v384_v35 = vsub.f32 1.0, %v383_v29  ;;  %617 = vmatpush.msra.mxu3 %v460_v46  ;;  %558 = vmatpush.msra.mxu0 %v411_v47  ;;  %v439_v4 = vld [vmem:[#allocation6 + $0x118] sm:$0xff]  ;;  %v406_v6 = vld [vmem:[#allocation6 + $0x10] sm:$0xff]  ;;  %v405_v10 = vld [vmem:[#allocation6 + $0x8] sm:$0xff] }
  0x37   : > { %578 = vmatpush.msra.mxu1 %v427_v49  ;;  %598 = vmatpush.msra.mxu2 %v443_v50  ;;  %v455_v5 = vld [vmem:[#allocation6 + $0x198] sm:$0xff]  ;;  %v422_v7 = vld [vmem:[#allocation6 + $0x90] sm:$0xff]  ;;  %v421_v11 = vld [vmem:[#allocation6 + $0x88] sm:$0xff] }
  0x38   : > { %v385_v41 = vmul.f32 %v913_v26, %v384_v35  ;;  %618 = vmatpush.msra.mxu3 %v459_v51  ;;  %559 = vmatpush.msra.mxu0 %v410_v53  ;;  %v438_v8 = vld [vmem:[#allocation6 + $0x110] sm:$0xff]  ;;  %v437_v12 = vld [vmem:[#allocation6 + $0x108] sm:$0xff]  ;;  %v404_v14 = vld [vmem:[#allocation6] sm:$0xff] }
  0x39   : > { %579 = vmatpush.msra.mxu1 %v426_v54  ;;  %599 = vmatpush.msra.mxu2 %v442_v56  ;;  %v454_v9 = vld [vmem:[#allocation6 + $0x190] sm:$0xff]  ;;  %v453_v13 = vld [vmem:[#allocation6 + $0x188] sm:$0xff]  ;;  %v420_v15 = vld [vmem:[#allocation6 + $0x80] sm:$0xff] }
  0x3a   : > { %v386_v48 = vadd.f32 %v913_v26, %v385_v41  ;;  %619 = vmatpush.msra.mxu3 %v458_v57  ;;  %560 = vmatpush.msra.mxu0 %v409_v58  ;;  %v436_v16 = vld [vmem:[#allocation6 + $0x100] sm:$0xff]  ;;  %v483_v18 = vld [vmem:[#allocation6 + $0x278] sm:$0xff]  ;;  %v482_v22 = vld [vmem:[#allocation6 + $0x270] sm:$0xff] }
  0x3b   : > { %580 = vmatpush.msra.mxu1 %v425_v59  ;;  %600 = vmatpush.msra.mxu2 %v441_v60  ;;  %v452_v17 = vld [vmem:[#allocation6 + $0x180] sm:$0xff]  ;;  %v499_v19 = vld [vmem:[#allocation6 + $0x2f8] sm:$0xff]  ;;  %v498_v23 = vld [vmem:[#allocation6 + $0x2f0] sm:$0xff] }
  0x3c   : > { %v390_v52 = vsel %vm1213_vm3, %v913_v26, %v386_v48  ;;  %620 = vmatpush.msra.mxu3 %v457_v61  ;;  %561 = vmatpush.msra.mxu0 %v408_v62  ;;  %v515_v20 = vld [vmem:[#allocation6 + $0x378] sm:$0xff]  ;;  %v514_v24 = vld [vmem:[#allocation6 + $0x370] sm:$0xff]  ;;  %v481_v26 = vld [vmem:[#allocation6 + $0x268] sm:$0xff] }
  0x3d   : > { %v395_v55 = vsel %vm392_vm4, %v394_v45, %v390_v52  ;;  %581 = vmatpush.msra.mxu1 %v424_v63  ;;  %601 = vmatpush.msra.mxu2 %v440_v0  ;;  %v531_v21 = vld [vmem:[#allocation6 + $0x3f8] sm:$0xff]  ;;  %v530_v25 = vld [vmem:[#allocation6 + $0x3f0] sm:$0xff]  ;;  %v497_v27 = vld [vmem:[#allocation6 + $0x2e8] sm:$0xff] }
  0x3e   : > { %399 = vperm.xlu0 %910, %v395_v55   ;;  %621 = vmatpush.msra.mxu3 %v456_v1  ;;  %v513_v28 = vld [vmem:[#allocation6 + $0x368] sm:$0xff]  ;;  %v480_v30 = vld [vmem:[#allocation6 + $0x260] sm:$0xff]  ;;  %v479_v34 = vld [vmem:[#allocation6 + $0x258] sm:$0xff] }
  0x3f   : > { %562 = vmatpush.msra.mxu0 %v407_v2  ;;  %582 = vmatpush.msra.mxu1 %v423_v3  ;;  %v529_v29 = vld [vmem:[#allocation6 + $0x3e8] sm:$0xff]  ;;  %v496_v31 = vld [vmem:[#allocation6 + $0x2e0] sm:$0xff]  ;;  %v495_v35 = vld [vmem:[#allocation6 + $0x2d8] sm:$0xff] }
  0x40   : > { %602 = vmatpush.msra.mxu2 %v439_v4  ;;  %622 = vmatpush.msra.mxu3 %v455_v5  ;;  %v512_v32 = vld [vmem:[#allocation6 + $0x360] sm:$0xff]  ;;  %v511_v36 = vld [vmem:[#allocation6 + $0x358] sm:$0xff]  ;;  %v478_v38 = vld [vmem:[#allocation6 + $0x250] sm:$0xff] }
  0x41   : > { %563 = vmatpush.msra.mxu0 %v406_v6  ;;  %583 = vmatpush.msra.mxu1 %v422_v7  ;;  %v528_v33 = vld [vmem:[#allocation6 + $0x3e0] sm:$0xff]  ;;  %v527_v37 = vld [vmem:[#allocation6 + $0x3d8] sm:$0xff]  ;;  %v494_v39 = vld [vmem:[#allocation6 + $0x2d0] sm:$0xff] }
  0x42   : > { %603 = vmatpush.msra.mxu2 %v438_v8  ;;  %623 = vmatpush.msra.mxu3 %v454_v9  ;;  %v510_v40 = vld [vmem:[#allocation6 + $0x350] sm:$0xff]  ;;  %v477_v42 = vld [vmem:[#allocation6 + $0x248] sm:$0xff]  ;;  %v476_v46 = vld [vmem:[#allocation6 + $0x240] sm:$0xff] }
  0x43   : > { %564 = vmatpush.msra.mxu0 %v405_v10  ;;  %584 = vmatpush.msra.mxu1 %v421_v11  ;;  %v526_v41 = vld [vmem:[#allocation6 + $0x3d0] sm:$0xff]  ;;  %v493_v43 = vld [vmem:[#allocation6 + $0x2c8] sm:$0xff]  ;;  %v492_v47 = vld [vmem:[#allocation6 + $0x2c0] sm:$0xff] }
  0x44   : > { %604 = vmatpush.msra.mxu2 %v437_v12  ;;  %624 = vmatpush.msra.mxu3 %v453_v13  ;;  %v509_v44 = vld [vmem:[#allocation6 + $0x348] sm:$0xff]  ;;  %v508_v48 = vld [vmem:[#allocation6 + $0x340] sm:$0xff]  ;;  %v475_v50 = vld [vmem:[#allocation6 + $0x238] sm:$0xff] }
  0x45   : > { %565 = vmatpush.msra.mxu0 %v404_v14  ;;  %585 = vmatpush.msra.mxu1 %v420_v15  ;;  %v525_v45 = vld [vmem:[#allocation6 + $0x3c8] sm:$0xff]  ;;  %v524_v49 = vld [vmem:[#allocation6 + $0x3c0] sm:$0xff]  ;;  %v491_v51 = vld [vmem:[#allocation6 + $0x2b8] sm:$0xff] }
  0x46   : > { %605 = vmatpush.msra.mxu2 %v436_v16  ;;  %625 = vmatpush.msra.mxu3 %v452_v17  ;;  %v507_v52 = vld [vmem:[#allocation6 + $0x338] sm:$0xff]  ;;  %v474_v54 = vld [vmem:[#allocation6 + $0x230] sm:$0xff]  ;;  %v473_v58 = vld [vmem:[#allocation6 + $0x228] sm:$0xff] }
  0x47   : > { %630 = vmatpush.msrb.mxu0 %v483_v18  ;;  %650 = vmatpush.msrb.mxu1 %v499_v19  ;;  %v523_v53 = vld [vmem:[#allocation6 + $0x3b8] sm:$0xff]  ;;  %v490_v55 = vld [vmem:[#allocation6 + $0x2b0] sm:$0xff]  ;;  %v489_v59 = vld [vmem:[#allocation6 + $0x2a8] sm:$0xff] }
  0x48   : > { %670 = vmatpush.msrb.mxu2 %v515_v20  ;;  %690 = vmatpush.msrb.mxu3 %v531_v21  ;;  %v506_v56 = vld [vmem:[#allocation6 + $0x330] sm:$0xff]  ;;  %v505_v60 = vld [vmem:[#allocation6 + $0x328] sm:$0xff]  ;;  %v472_v62 = vld [vmem:[#allocation6 + $0x220] sm:$0xff] }
  0x49   : > { %631 = vmatpush.msrb.mxu0 %v482_v22  ;;  %651 = vmatpush.msrb.mxu1 %v498_v23  ;;  %v522_v57 = vld [vmem:[#allocation6 + $0x3b0] sm:$0xff]  ;;  %v521_v61 = vld [vmem:[#allocation6 + $0x3a8] sm:$0xff]  ;;  %v488_v63 = vld [vmem:[#allocation6 + $0x2a0] sm:$0xff] }
  0x4a   : > { %671 = vmatpush.msrb.mxu2 %v514_v24  ;;  %691 = vmatpush.msrb.mxu3 %v530_v25  ;;  %v504_v0 = vld [vmem:[#allocation6 + $0x320] sm:$0xff]  ;;  %v471_v2 = vld [vmem:[#allocation6 + $0x218] sm:$0xff]  ;;  %v470_v6 = vld [vmem:[#allocation6 + $0x210] sm:$0xff] }
  0x4b   : > { %632 = vmatpush.msrb.mxu0 %v481_v26  ;;  %652 = vmatpush.msrb.mxu1 %v497_v27  ;;  %v520_v1 = vld [vmem:[#allocation6 + $0x3a0] sm:$0xff]  ;;  %v487_v3 = vld [vmem:[#allocation6 + $0x298] sm:$0xff]  ;;  %v486_v7 = vld [vmem:[#allocation6 + $0x290] sm:$0xff] }
  0x4c   : > { %672 = vmatpush.msrb.mxu2 %v513_v28  ;;  %692 = vmatpush.msrb.mxu3 %v529_v29  ;;  %v503_v4 = vld [vmem:[#allocation6 + $0x318] sm:$0xff]  ;;  %v267_v8 = vld [vmem:[%s1188_s23] sm:$0xff]  ;;  %v268_v9 = vld [vmem:[%s1188_s23 + $0x8] sm:$0xff] }
  0x4d   : > { %633 = vmatpush.msrb.mxu0 %v480_v30  ;;  %653 = vmatpush.msrb.mxu1 %v496_v31  ;;  %v519_v5 = vld [vmem:[#allocation6 + $0x398] sm:$0xff]  ;;  %v269_v10 = vld [vmem:[%s1188_s23 + $0x10] sm:$0xff]  ;;  %v469_v14 = vld [vmem:[#allocation6 + $0x208] sm:$0xff] }
  0x4e   : > { %673 = vmatpush.msrb.mxu2 %v512_v32  ;;  %693 = vmatpush.msrb.mxu3 %v528_v33  ;;  %v270_v11 = vld [vmem:[%s1188_s23 + $0x18] sm:$0xff]  ;;  %v502_v12 = vld [vmem:[#allocation6 + $0x310] sm:$0xff]  ;;  %v271_v15 = vld [vmem:[%s1188_s23 + $0x20] sm:$0xff] }
  0x4f   : > { %634 = vmatpush.msrb.mxu0 %v479_v34  ;;  %654 = vmatpush.msrb.mxu1 %v495_v35  ;;  %v518_v13 = vld [vmem:[#allocation6 + $0x390] sm:$0xff]  ;;  %v272_v16 = vld [vmem:[%s1188_s23 + $0x28] sm:$0xff]  ;;  %v468_v21 = vld [vmem:[#allocation6 + $0x200] sm:$0xff] }
  0x50   : > { %674 = vmatpush.msrb.mxu2 %v511_v36  ;;  %694 = vmatpush.msrb.mxu3 %v527_v37  ;;  %v485_v17 = vld [vmem:[#allocation6 + $0x288] sm:$0xff]  ;;  %v273_v20 = vld [vmem:[%s1188_s23 + $0x30] sm:$0xff]  ;;  %v484_v22 = vld [vmem:[#allocation6 + $0x280] sm:$0xff] }
  0x51   : > { %635 = vmatpush.msrb.mxu0 %v478_v38  ;;  %655 = vmatpush.msrb.mxu1 %v494_v39  ;;  %v501_v18 = vld [vmem:[#allocation6 + $0x308] sm:$0xff]  ;;  %v274_v24 = vld [vmem:[%s1188_s23 + $0x38] sm:$0xff]  ;;  %v500_v25 = vld [vmem:[#allocation6 + $0x300] sm:$0xff]  ;;  %s990_s23 = scalar_lea.hbm %s989_s24, 1 }
  0x52   : > { %675 = vmatpush.msrb.mxu2 %v510_v40  ;;  %695 = vmatpush.msrb.mxu3 %v526_v41  ;;  %v517_v19 = vld [vmem:[#allocation6 + $0x388] sm:$0xff]  ;;  %v516_v26 = vld [vmem:[#allocation6 + $0x380] sm:$0xff]  ;;  %p991_p1 = scmp.ne.s32.totalorder %s989_s24, %s990_s23  ;;  %p996_p12 = scmp.lt.s32.totalorder %s994_s8, %s990_s23 }
  0x53   : > { %636 = vmatpush.msrb.mxu0 %v477_v42  ;;  %656 = vmatpush.msrb.mxu1 %v493_v43 }
  0x54   : > { %676 = vmatpush.msrb.mxu2 %v509_v44  ;;  %696 = vmatpush.msrb.mxu3 %v525_v45  ;;  %p992_p9 = pnand %p991_p1, %p1162_p4  ;;  %p997_p13 = por %p996_p12, %p995_p11 }
  0x55   : > { %637 = vmatpush.msrb.mxu0 %v476_v46  ;;  %657 = vmatpush.msrb.mxu1 %v492_v47 }
  0x56   : > { %677 = vmatpush.msrb.mxu2 %v508_v48  ;;  %697 = vmatpush.msrb.mxu3 %v524_v49  ;;  %p993_p10 = pneg %p992_p9 }
  0x57   : > { %638 = vmatpush.msrb.mxu0 %v475_v50  ;;  %658 = vmatpush.msrb.mxu1 %v491_v51 }
  0x58   : > { %678 = vmatpush.msrb.mxu2 %v507_v52  ;;  %698 = vmatpush.msrb.mxu3 %v523_v53  ;;  %p998_p0 = pnand %p997_p13, %p993_p10 }
  0x59   : > { %639 = vmatpush.msrb.mxu0 %v474_v54  ;;  %659 = vmatpush.msrb.mxu1 %v490_v55 }
  0x5a   : > { %679 = vmatpush.msrb.mxu2 %v506_v56  ;;  %699 = vmatpush.msrb.mxu3 %v522_v57 }
  0x5b   : > { %640 = vmatpush.msrb.mxu0 %v473_v58  ;;  %660 = vmatpush.msrb.mxu1 %v489_v59 }
  0x5c   : > { %680 = vmatpush.msrb.mxu2 %v505_v60  ;;  %700 = vmatpush.msrb.mxu3 %v521_v61 }
  0x5d   : > { %641 = vmatpush.msrb.mxu0 %v472_v62  ;;  %661 = vmatpush.msrb.mxu1 %v488_v63 }
  0x5e   : > { %681 = vmatpush.msrb.mxu2 %v504_v0  ;;  %701 = vmatpush.msrb.mxu3 %v520_v1 }
  0x5f   : > { %642 = vmatpush.msrb.mxu0 %v471_v2  ;;  %662 = vmatpush.msrb.mxu1 %v487_v3 }
  0x60   : > { %682 = vmatpush.msrb.mxu2 %v503_v4  ;;  %702 = vmatpush.msrb.mxu3 %v519_v5 }
  0x61   : > { %643 = vmatpush.msrb.mxu0 %v470_v6  ;;  %663 = vmatpush.msrb.mxu1 %v486_v7 }
  0x62   : > { %683 = vmatpush.msrb.mxu2 %v502_v12  ;;  %703 = vmatpush.msrb.mxu3 %v518_v13 }
  0x63   : > { %644 = vmatpush.msrb.mxu0 %v469_v14  ;;  %664 = vmatpush.msrb.mxu1 %v485_v17 }
  0x64   : > { %684 = vmatpush.msrb.mxu2 %v501_v18  ;;  %704 = vmatpush.msrb.mxu3 %v517_v19 }
  0x65   : > { %645 = vmatpush.msrb.mxu0 %v468_v21  ;;  %665 = vmatpush.msrb.mxu1 %v484_v22 }
  0x66   : > { %685 = vmatpush.msrb.mxu2 %v500_v25  ;;  %705 = vmatpush.msrb.mxu3 %v516_v26 }
  0x9e   : > { %v286_v23 = vpop.permute.xlu0 %285 }
  0x9f   : > { %vm287_vm5 = vcmp.eq.s32.totalorder %v286_v23, 1 }
  0xa0   : > { %v288_v27 = vsel %vm287_vm5, %v267_v8, 0.0  ;;  %v289_v28 = vsel %vm287_vm5, %v268_v9, 0.0  ;;  %v290_v29 = vsel %vm287_vm5, %v269_v10, 0.0  ;;  %v291_v30 = vsel %vm287_vm5, %v270_v11, 0.0 }
  0xa1   : > { %v292_v31 = vsel %vm287_vm5, %v271_v15, 0.0  ;;  %v293_v32 = vsel %vm287_vm5, %v272_v16, 0.0  ;;  %v294_v33 = vsel %vm287_vm5, %v273_v20, 0.0  ;;  %v295_v34 = vsel %vm287_vm5, %v274_v24, 0.0 }
  0xa2   : > { %v297_v35 = vrot.slane %v288_v27, 4  ;;  %v303_v36 = vrot.slane %v289_v28, 4  ;;  %v309_v37 = vrot.slane %v290_v29, 4  ;;  %v315_v38 = vrot.slane %v291_v30, 4 }
  0xa3   : > { %v321_v39 = vrot.slane %v292_v31, 4  ;;  %v327_v40 = vrot.slane %v293_v32, 4  ;;  %v333_v41 = vrot.slane %v294_v33, 4  ;;  %v339_v42 = vrot.slane %v295_v34, 4 }
  0xa4   : > { %v298_v43 = vadd.f32 %v297_v35, %v288_v27  ;;  %v304_v44 = vadd.f32 %v303_v36, %v289_v28  ;;  %v310_v45 = vadd.f32 %v309_v37, %v290_v29  ;;  %v316_v46 = vadd.f32 %v315_v38, %v291_v30 }
  0xa5   : > { %v322_v47 = vadd.f32 %v321_v39, %v292_v31  ;;  %v328_v48 = vadd.f32 %v327_v40, %v293_v32  ;;  %v334_v49 = vadd.f32 %v333_v41, %v294_v33  ;;  %v340_v50 = vadd.f32 %v339_v42, %v295_v34 }
  0xa6   : > { %v299_v51 = vrot.slane %v298_v43, 2  ;;  %v305_v52 = vrot.slane %v304_v44, 2  ;;  %v311_v53 = vrot.slane %v310_v45, 2  ;;  %v317_v54 = vrot.slane %v316_v46, 2 }
  0xa7   : > { %v323_v55 = vrot.slane %v322_v47, 2  ;;  %v329_v56 = vrot.slane %v328_v48, 2  ;;  %v335_v57 = vrot.slane %v334_v49, 2  ;;  %v341_v58 = vrot.slane %v340_v50, 2 }
  0xa8   : > { %v300_v59 = vadd.f32 %v299_v51, %v298_v43  ;;  %v306_v60 = vadd.f32 %v305_v52, %v304_v44  ;;  %v312_v61 = vadd.f32 %v311_v53, %v310_v45  ;;  %v318_v62 = vadd.f32 %v317_v54, %v316_v46  ;;  %v532_v44 = vld [vmem:[%s1278_s3] sm:$0x1] }
  0xa9   : > { %v324_v63 = vadd.f32 %v323_v55, %v322_v47  ;;  %v330_v0 = vadd.f32 %v329_v56, %v328_v48  ;;  %v336_v1 = vadd.f32 %v335_v57, %v334_v49  ;;  %v342_v2 = vadd.f32 %v341_v58, %v340_v50 }
  0xaa   : > { %v301_v3 = vrot.slane %v300_v59, 1  ;;  %v307_v4 = vrot.slane %v306_v60, 1  ;;  %v313_v5 = vrot.slane %v312_v61, 1  ;;  %v319_v6 = vrot.slane %v318_v62, 1 }
  0xab   : > { %v325_v7 = vrot.slane %v324_v63, 1  ;;  %v331_v8 = vrot.slane %v330_v0, 1  ;;  %v337_v9 = vrot.slane %v336_v1, 1  ;;  %v343_v10 = vrot.slane %v342_v2, 1 }
  0xac   : > { %v308_v11 = vadd.f32 %v307_v4, %v306_v60  ;;  %v314_v12 = vadd.f32 %v313_v5, %v312_v61  ;;  %v320_v13 = vadd.f32 %v319_v6, %v318_v62  ;;  %v302_v19 = vadd.f32 %v301_v3, %v300_v59 }
  0xad   : > { %v326_v14 = vadd.f32 %v325_v7, %v324_v63  ;;  %v332_v15 = vadd.f32 %v331_v8, %v330_v0  ;;  %v338_v16 = vadd.f32 %v337_v9, %v336_v1  ;;  %v344_v17 = vadd.f32 %v343_v10, %v342_v2 }
  0xae   : > { %v353_v20 = vrot.slane %v308_v11, 7  ;;  %v354_v21 = vrot.slane %v314_v12, 6  ;;  %v355_v22 = vrot.slane %v320_v13, 5 }
  0xaf   : > { %v356_v23 = vrot.slane %v326_v14, 4  ;;  %v357_v24 = vrot.slane %v332_v15, 3  ;;  %v358_v25 = vrot.slane %v338_v16, 2  ;;  %v359_v26 = vrot.slane %v344_v17, 1 }
  0xb0   : > { %v400_v18 = vpop.permute.xlu0 %399  ;;  %v361_v27 = vsel %vm360_vm6, %v302_v19, %v353_v20  ;;  %v363_v28 = vsel %vm362_vm7, %v354_v21, %v355_v22 }
  0xb1   : > { %v402_v29 = vperm.slane %v400_v18, 0  ;;  %v365_v30 = vsel %vm364_vm8, %v361_v27, %v363_v28  ;;  %v367_v31 = vsel %vm366_vm9, %v356_v23, %v357_v24  ;;  %v369_v32 = vsel %vm368_vm10, %v358_v25, %v359_v26 }
  0xb2   : > { %v371_v33 = vsel %vm370_vm11, %v367_v31, %v369_v32 }
  0xb3   : > { %v373_v34 = vsel %vm372_vm12, %v365_v30, %v371_v33 }
  0xb4   : > { %v403_v35 = vmul.f32 %v402_v29, %v373_v34 }
  0xb6   : > { %v534_v36 = vperm.slane %v403_v35, 0  ;;  %v535_v37 = vperm.slane %v403_v35, 1  ;;  %v536_v38 = vperm.slane %v403_v35, 2  ;;  %v537_v39 = vperm.slane %v403_v35, 3 }
  0xb7   : > { %v538_v40 = vperm.slane %v403_v35, 4  ;;  %v539_v41 = vperm.slane %v403_v35, 5  ;;  %v540_v42 = vperm.slane %v403_v35, 6  ;;  %v541_v43 = vperm.slane %v403_v35, 7 }
  0xb8   : > { %566 = vmatmul.f32.vlgmr.msra.gmra.mxu0 %v534_v36  ;;  %586 = vmatmul.f32.vlgmr.msra.gmra.mxu1 %v535_v37 }
  0xb9   : > { %606 = vmatmul.f32.vlgmr.msra.gmra.mxu2 %v536_v38  ;;  %626 = vmatmul.f32.vlgmr.msra.gmra.mxu3 %v537_v39 }
  0xc0   : > { %646 = vmatmul.f32.vlgmr.msrb.gmra.mxu0 %v538_v40  ;;  %666 = vmatmul.f32.vlgmr.msrb.gmra.mxu1 %v539_v41 }
  0xc1   : > { %686 = vmatmul.f32.vlgmr.msrb.gmra.mxu2 %v540_v42  ;;  %706 = vmatmul.f32.vlgmr.msrb.gmra.mxu3 %v541_v43 }
 0x135   : > { %v567_v45 = vpop.f32.mrf.mxu0  ;;  %v587_v47 = vpop.f32.mrf.mxu1 }
 0x136   : > { %v568_v46 = vadd.f32 %v567_v45, %v532_v44 }
 0x138   : > { %v588_v48 = vadd.f32 %v587_v47, %v568_v46 }
 0x13c   : > { %v607_v49 = vpop.f32.mrf.mxu2  ;;  %v627_v50 = vpop.f32.mrf.mxu3 }
 0x13d   : > { %v608_v51 = vadd.f32 %v607_v49, %v588_v48  ;;  %v647_v53 = vpop.f32.mrf.mxu0  ;;  %v667_v55 = vpop.f32.mrf.mxu1 }
 0x13f   : > { %v628_v52 = vadd.f32 %v627_v50, %v608_v51 }
 0x141   : > { %v648_v54 = vadd.f32 %v647_v53, %v628_v52 }
 0x143   : > { %v668_v56 = vadd.f32 %v667_v55, %v648_v54 }
 0x144   : > { %v687_v57 = vpop.f32.mrf.mxu2  ;;  %v707_v59 = vpop.f32.mrf.mxu3 }
 0x145   : > { %v688_v58 = vadd.f32 %v687_v57, %v668_v56 }
 0x147   : > { %v708_v60 = vadd.f32 %v707_v59, %v688_v58 }
 0x149   : > { %710 = vst [vmem:[%s258_s29] sm:$0x1] %v708_v60 }
 0x14a   : > { %1001 = shalt.err (!%p998_p0)
}
 0x14b   : > { %840 = dma.vmem_to_hbm [thread:$0]  (%p1162_p4), %s723_s30, 16, %s725_s5, %s712_s10  }
 0x14c PF: > { %s736_s7 = sand.u32 1, %s1040_s15   ;;  %p851_p2 = pnand %p824_p6, %p1170_p7 }
 0x14d   : > { %s737_s22 = scalar_lea.sflag [#allocation5], %s736_s7 }
 0x14e   : > { %p852_p5 = pneg %p851_p2 }
 0x150   : > { %1035 = dma.done.wait (%p852_p5), %s737_s22, 16  }
 0x151   : > { %1037 = vsyncadd (%p852_p5), %s737_s22, 4294967280  ;;  %s21_s20 = sadd.s32 1, %s1060_s20   ;;  %s1288_s15 = smov %s1044_s16 }
 0x152   : > { %p18_p8 = scmp.ge.s32.totalorder %s21_s20, 4   ;;  %s1289_s16 = smov %s1048_s17 }
 0x153   : > { %s1290_s17 = smov %s1168_s12  ;;  %s1291_s18 = smov %s1056_s19 }
 0x154   : > { %s1292_s19 = smov %s1294_s6  ;;  %20 = sbr.rel (!%p18_p8) target bundleno = 7 (0x7), region = 96 }
 0x159   :  { %742 = vsyncpa [#allocation4], 1 }
 0x15a   :  { %744 = vsyncpa [#allocation4 + $0x1], 1 }
 0x15b   :  { %745 = vsyncpa [#allocation7], 1 }
 0x15c   :  { %746 = vsyncpa [#allocation5], 1 }
 0x15d   :  { %748 = vsyncpa [#allocation5 + $0x1], 1 }

</bundles_post_ra>
